<compile_context>
chip_gen: v6e
topology: v6e:2x2x1
jax: 0.10.0
libtpu: 0.0.40
codegen_flags: <defaults>
</compile_context>

<pallas_src>
import jax
import jax.numpy as jnp
from jax import lax
from jax.experimental import pallas as pl
from jax.experimental.pallas import tpu as pltpu

LANE = 128
SUBLANE = 8
MAX_TILE_ROWS = 4096   # 4096 x 128 f32 = 2 MiB per pipeline buffer


def _round_up(a: int, b: int) -> int:
    return ((a + b - 1) // b) * b


def _cdiv(a: int, b: int) -> int:
    return (a + b - 1) // b


def _make_hinge_kernel(tile_rows: int, nb: int, full_rows: int, rem_lanes: int,
                       needs_mask: bool, t_dtype):
    """Kernel producing per-block partial sums.

    Output block (1, 3, 8, 128):
      [0] partial sum of relu(1 - x) over positives
      [1] partial sum of relu(x + 1) over negatives
      [2] partial count of positives
    """

    def _pos_mask(t):
        # Compare in the targets' native dtype (equivalent to torch .ge(0.5)).
        if t_dtype == jnp.bool_:
            return t
        if jnp.issubdtype(t_dtype, jnp.floating):
            return t >= jnp.asarray(0.5, t_dtype)
        return t >= jnp.asarray(1, t_dtype)     # integers: ge(0.5) == ge(1)

    def _fold(a):
        # (T, 128) -> (8, 128): pure vreg-wise adds (VPU), no cross-lane work.
        return jnp.sum(a.reshape(tile_rows // SUBLANE, SUBLANE, LANE), axis=0)

    def kernel(x_ref, t_ref, out_ref):
        i = pl.program_id(0)
        x = x_ref[...].astype(jnp.float32)      # per-block cast in VMEM
        pos = _pos_mask(t_ref[...])

        def _write(pos_term, neg_term, pos_cnt):
            out_ref[0, 0] = _fold(pos_term)
            out_ref[0, 1] = _fold(neg_term)
            out_ref[0, 2] = _fold(pos_cnt)

        def _fast():
            # Full block: no validity mask needed.
            pos_term = jnp.where(pos, jnp.maximum(1.0 - x, 0.0), 0.0)
            neg_term = jnp.where(pos, 0.0, jnp.maximum(x + 1.0, 0.0))
            _write(pos_term, neg_term, pos.astype(jnp.float32))

        if not needs_mask:
            _fast()
        else:
            @pl.when(i != nb - 1)
            def _():
                _fast()

            @pl.when(i == nb - 1)
            def _():
                # Ragged tail: mask out padded elements / out-of-range rows.
                row = lax.broadcasted_iota(jnp.int32, (tile_rows, LANE), 0)
                lane = lax.broadcasted_iota(jnp.int32, (tile_rows, LANE), 1)
                grow = i * tile_rows + row      # global row index (int32-safe)
                valid = jnp.logical_or(
                    grow < full_rows,
                    jnp.logical_and(grow == full_rows, lane < rem_lanes))
                pos_m = jnp.logical_and(pos, valid)
                neg_m = jnp.logical_and(jnp.logical_not(pos), valid)
                # jnp.where (select) does not propagate NaN/Inf from garbage.
                pos_term = jnp.where(pos_m, jnp.maximum(1.0 - x, 0.0), 0.0)
                neg_term = jnp.where(neg_m, jnp.maximum(x + 1.0, 0.0), 0.0)
                _write(pos_term, neg_term, pos_m.astype(jnp.float32))

    return kernel


@jax.jit
def hinge_loss(inputs, targets):
    """inputs, targets: same shape (e.g. NCHW), any float/int/bool dtype.

    Returns scalar f32 loss.
    """
    n = int(inputs.size)

    x = inputs.reshape(-1)          # native dtype; reshape of contiguous is free
    t = targets.reshape(-1)

    # Pad only to a multiple of LANE (and to >= 8 rows for tiny inputs); the
    # in-kernel tail mask handles the ragged last block, so typical NCHW sizes
    # never hit jnp.pad at all.
    n_pad = _round_up(n, LANE)
    rows = n_pad // LANE
    if rows < SUBLANE:
        rows = SUBLANE
        n_pad = rows * LANE
    pad = n_pad - n
    if pad:
        x = jnp.pad(x, (0, pad))
        t = jnp.pad(t, (0, pad))

    # Keep at least ~4 grid blocks (megacore sharding + pipeline overlap),
    # capped at MAX_TILE_ROWS, tile rows always a multiple of 8.
    tile_rows = max(SUBLANE, min(MAX_TILE_ROWS, _round_up(_cdiv(rows, 4), SUBLANE)))
    nb = _cdiv(rows, tile_rows)
    needs_mask = (nb * tile_rows * LANE != n)

    x2 = x.reshape(rows, LANE)
    t2 = t.reshape(rows, LANE)

    parts = pl.pallas_call(
        _make_hinge_kernel(tile_rows, nb, n // LANE, n % LANE, needs_mask,
                           t2.dtype),
        out_shape=jax.ShapeDtypeStruct((nb, 3, SUBLANE, LANE), jnp.float32),
        grid=(nb,),
        in_specs=[
            pl.BlockSpec((tile_rows, LANE), lambda i: (i, 0)),
            pl.BlockSpec((tile_rows, LANE), lambda i: (i, 0)),
        ],
        out_specs=pl.BlockSpec((1, 3, SUBLANE, LANE), lambda i: (i, 0, 0, 0)),
        compiler_params=pltpu.CompilerParams(
            dimension_semantics=("parallel",),   # independent blocks: megacore OK
            vmem_limit_bytes=32 * 1024 * 1024,   # safe on v5e/v6e/v7x
        ),
    )(x2, t2)

    sums = jnp.sum(parts, axis=(0, 2, 3))     # (3,): pos_sum, neg_sum, pos_cnt
    pos_sum, neg_sum, pos_cnt = sums[0], sums[1], sums[2]
    neg_cnt = jnp.float32(n) - pos_cnt        # all real elements are valid

    pos_loss = jnp.where(pos_cnt > 0.0, pos_sum / jnp.maximum(pos_cnt, 1.0), 0.0)
    neg_loss = jnp.where(neg_cnt > 0.0, neg_sum / jnp.maximum(neg_cnt, 1.0), 0.0)
    return pos_loss + neg_loss


def _hinge_loss_ref(inputs, targets):
    """Pure-JAX reference of the intended semantics."""
    x = inputs.reshape(-1).astype(jnp.float32)
    t = targets.reshape(-1).astype(jnp.float32)
    pos_m = (t >= 0.5).astype(jnp.float32)
    neg_m = (t < 0.5).astype(jnp.float32)
    pc = jnp.sum(pos_m)
    nc = jnp.sum(neg_m)
    ps = jnp.sum(jnp.maximum(1.0 - x, 0.0) * pos_m)
    ns = jnp.sum(jnp.maximum(x + 1.0, 0.0) * neg_m)
    pos_loss = jnp.where(pc > 0, ps / jnp.maximum(pc, 1.0), 0.0)
    neg_loss = jnp.where(nc > 0, ns / jnp.maximum(nc, 1.0), 0.0)
    return pos_loss + neg_loss


if __name__ == "__main__":
    key = jax.random.PRNGKey(0)
    k1, k2, k3, k4 = jax.random.split(key, 4)

    # Test 1: aligned NCHW prediction/target pair — unmasked fast path.
    B, C, H, W = 2, 4, 16, 16
    inputs = jax.random.normal(k1, (B, C, H, W), dtype=jnp.float32)
    targets = (jax.random.uniform(k2, (B, C, H, W)) > 0.5).astype(jnp.float32)
    loss = jax.block_until_ready(hinge_loss(inputs, targets))
    ref = jax.block_until_ready(_hinge_loss_ref(inputs, targets))
    assert jnp.allclose(loss, ref, rtol=1e-5, atol=1e-5), (loss, ref)

    # Test 2: ragged size — exercises the masked tail block + pad path.
    inputs2 = jax.random.normal(k3, (2, 3, 7, 11), dtype=jnp.float32)
    targets2 = (jax.random.uniform(k4, (2, 3, 7, 11)) > 0.5).astype(jnp.float32)
    loss2 = jax.block_until_ready(hinge_loss(inputs2, targets2))
    ref2 = jax.block_until_ready(_hinge_loss_ref(inputs2, targets2))
    assert jnp.allclose(loss2, ref2, rtol=1e-5, atol=1e-5), (loss2, ref2)

    print("KERNEL_OK")
</pallas_src>

<mosaic_0001>
module attributes {stable_mosaic.version = 11 : i64} {
  func.func @kernel(%arg0: i32, %arg1: memref<8x128xf32, #tpu.memory_space<vmem>>, %arg2: memref<8x128xf32, #tpu.memory_space<vmem>>, %arg3: memref<1x3x8x128xf32, #tpu.memory_space<vmem>>) attributes {dimension_semantics = [#tpu.dimension_semantics<parallel>], iteration_bounds = array<i64: 2>, scalar_prefetch = 0 : i64, scratch_operands = 0 : i64, tpu.core_type = #tpu.core_type<tc>, window_params = [{transform_indices = @transform_0, window_bounds = array<i64: 8, 128>}, {transform_indices = @transform_1, window_bounds = array<i64: 8, 128>}, {transform_indices = @transform_2, window_bounds = array<i64: 1, 3, 8, 128>}]} {
    %c0 = arith.constant 0 : index
    %c0_0 = arith.constant 0 : index
    %0 = vector.load %arg1[%c0, %c0_0] : memref<8x128xf32, #tpu.memory_space<vmem>>, vector<8x128xf32>
    %c0_1 = arith.constant 0 : index
    %c0_2 = arith.constant 0 : index
    %1 = vector.load %arg2[%c0_1, %c0_2] : memref<8x128xf32, #tpu.memory_space<vmem>>, vector<8x128xf32>
    %cst = arith.constant 5.000000e-01 : f32
    %2 = vector.broadcast %cst : f32 to vector<8x128xf32>
    %3 = arith.cmpf oge, %1, %2 : vector<8x128xf32>
    %cst_3 = arith.constant 1.000000e+00 : f32
    %4 = vector.broadcast %cst_3 : f32 to vector<8x128xf32>
    %5 = arith.subf %4, %0 : vector<8x128xf32>
    %cst_4 = arith.constant 0.000000e+00 : f32
    %6 = vector.broadcast %cst_4 : f32 to vector<8x128xf32>
    %7 = arith.maximumf %5, %6 : vector<8x128xf32>
    %cst_5 = arith.constant 0.000000e+00 : f32
    %8 = vector.broadcast %cst_5 : f32 to vector<8x128xf32>
    %9 = arith.select %3, %7, %8 : vector<8x128xi1>, vector<8x128xf32>
    %cst_6 = arith.constant 1.000000e+00 : f32
    %10 = vector.broadcast %cst_6 : f32 to vector<8x128xf32>
    %11 = arith.addf %0, %10 : vector<8x128xf32>
    %cst_7 = arith.constant 0.000000e+00 : f32
    %12 = vector.broadcast %cst_7 : f32 to vector<8x128xf32>
    %13 = arith.maximumf %11, %12 : vector<8x128xf32>
    %cst_8 = arith.constant 0.000000e+00 : f32
    %14 = vector.broadcast %cst_8 : f32 to vector<8x128xf32>
    %15 = arith.select %3, %14, %13 : vector<8x128xi1>, vector<8x128xf32>
    %16 = arith.extui %3 : vector<8x128xi1> to vector<8x128xi32>
    %17 = arith.sitofp %16 : vector<8x128xi32> to vector<8x128xf32>
    %18 = vector.shape_cast %9 : vector<8x128xf32> to vector<1x8x128xf32>
    %cst_9 = arith.constant dense<0.000000e+00> : vector<8x128xf32>
    %19 = vector.multi_reduction <add>, %18, %cst_9 [0] : vector<1x8x128xf32> to vector<8x128xf32>
    %c0_10 = arith.constant 0 : index
    %c0_11 = arith.constant 0 : index
    %c0_12 = arith.constant 0 : index
    %c0_13 = arith.constant 0 : index
    %20 = vector.load %arg3[%c0_10, %c0_11, %c0_12, %c0_13] : memref<1x3x8x128xf32, #tpu.memory_space<vmem>>, vector<1x1x8x128xf32>
    %21 = vector.shape_cast %20 : vector<1x1x8x128xf32> to vector<8x128xf32>
    %22 = vector.shape_cast %19 : vector<8x128xf32> to vector<1x1x8x128xf32>
    tpu.vector_store %arg3[%c0_10, %c0_11, %c0_12, %c0_13], %22 {strides = array<i32>} : memref<1x3x8x128xf32, #tpu.memory_space<vmem>>, vector<1x1x8x128xf32>,
    %23 = vector.shape_cast %15 : vector<8x128xf32> to vector<1x8x128xf32>
    %cst_14 = arith.constant dense<0.000000e+00> : vector<8x128xf32>
    %24 = vector.multi_reduction <add>, %23, %cst_14 [0] : vector<1x8x128xf32> to vector<8x128xf32>
    %c0_15 = arith.constant 0 : index
    %c1 = arith.constant 1 : index
    %c0_16 = arith.constant 0 : index
    %c0_17 = arith.constant 0 : index
    %25 = vector.load %arg3[%c0_15, %c1, %c0_16, %c0_17] : memref<1x3x8x128xf32, #tpu.memory_space<vmem>>, vector<1x1x8x128xf32>
    %26 = vector.shape_cast %25 : vector<1x1x8x128xf32> to vector<8x128xf32>
    %27 = vector.shape_cast %24 : vector<8x128xf32> to vector<1x1x8x128xf32>
    tpu.vector_store %arg3[%c0_15, %c1, %c0_16, %c0_17], %27 {strides = array<i32>} : memref<1x3x8x128xf32, #tpu.memory_space<vmem>>, vector<1x1x8x128xf32>,
    %28 = vector.shape_cast %17 : vector<8x128xf32> to vector<1x8x128xf32>
    %cst_18 = arith.constant dense<0.000000e+00> : vector<8x128xf32>
    %29 = vector.multi_reduction <add>, %28, %cst_18 [0] : vector<1x8x128xf32> to vector<8x128xf32>
    %c0_19 = arith.constant 0 : index
    %c2 = arith.constant 2 : index
    %c0_20 = arith.constant 0 : index
    %c0_21 = arith.constant 0 : index
    %30 = vector.load %arg3[%c0_19, %c2, %c0_20, %c0_21] : memref<1x3x8x128xf32, #tpu.memory_space<vmem>>, vector<1x1x8x128xf32>
    %31 = vector.shape_cast %30 : vector<1x1x8x128xf32> to vector<8x128xf32>
    %32 = vector.shape_cast %29 : vector<8x128xf32> to vector<1x1x8x128xf32>
    tpu.vector_store %arg3[%c0_19, %c2, %c0_20, %c0_21], %32 {strides = array<i32>} : memref<1x3x8x128xf32, #tpu.memory_space<vmem>>, vector<1x1x8x128xf32>,
    return
  }
  func.func @transform_0(%arg0: i32) -> (i32, i32) {
    %c0_i32 = arith.constant 0 : i32
    %c0_i32_0 = arith.constant 0 : i32
    return %arg0, %c0_i32 : i32, i32
  }
  func.func @transform_1(%arg0: i32) -> (i32, i32) {
    %c0_i32 = arith.constant 0 : i32
    %c0_i32_0 = arith.constant 0 : i32
    return %arg0, %c0_i32 : i32, i32
  }
  func.func @transform_2(%arg0: i32) -> (i32, i32, i32, i32) {
    %c0_i32 = arith.constant 0 : i32
    %c0_i32_0 = arith.constant 0 : i32
    %c0_i32_1 = arith.constant 0 : i32
    %c0_i32_2 = arith.constant 0 : i32
    return %arg0, %c0_i32, %c0_i32_0, %c0_i32_1 : i32, i32, i32, i32
  }
}

</mosaic_0001>

<bundles_post_ra>
// kernel: hinge_loss.1
= control target key start
LH: loop header
LB: loop body
LE: loop exit
PB: predicated region body
PF: predicated region fallthrough
CT: control target
= control target key end

     0   :  { %s291_s9 = smov 0   ;;  %s311_s0 = inlined_call_operand.vmem [shape: f32[16,128], index: 0, kind: input, shape index: {}]   ;;  %s312_s1 = inlined_call_operand.vmem [shape: f32[16,128], index: 1, kind: input, shape index: {}]   ;;  %s313_s2 = inlined_call_operand.vmem [shape: f32[2,3,8,128], index: 2, kind: output, shape index: {}]  }
   0x1 LB: > { %s244_s10 = sadd.s32 4294967295, %s273_s9   ;;  %p248_p0 = scmp.ge.s32.totalorder %s273_s9, 1  ;;  %s273_s9 = sphi %s291_s9, %s12_s9  }
   0x2   : > { %p120_p1 = scmp.lt.s32.totalorder %s273_s9, 3 }
   0x4   : > { %p121_p2 = pnand %p248_p0, %p120_p1 }
   0x5   : > { %p145_p3 = scmp.lt.s32.totalorder (!%p121_p2), %s244_s10, 1 }
   0x6   : > { %124 = sbr.rel (%p121_p2) target bundleno = 21 (0x15), region = 28 }
   0xb   : > { %s315_s10 = smov (!%p145_p3, %s244_s10), 1  ;;  %v275_v4 = vmov 0.0  }
   0xc   : > { %s249_s11 = sshll.u32 %s315_s10, 3  ;;  %s257_s12 = smul.u32 24, %s315_s10 }
   0xd   : > { %s148_s15 = scalar_lea.vmem %s311_s0, %s249_s11  ;;  %s152_s18 = scalar_lea.vmem %s312_s1, %s249_s11 }
   0xe   : > { %s157_s21 = scalar_lea.vmem %s313_s2, %s257_s12  ;;  %v158_v0 = vld [vmem:[%s148_s15] sm:$0xff] }
   0xf   : > { %v159_v1 = vld [vmem:[%s152_s18] sm:$0xff]  ;;  %v161_v2 = vsub.f32 1.0, %v158_v0  ;;  %v164_v3 = vadd.f32 1.0, %v158_v0 }
  0x10   : > { %vm160_vm0 = vcmp.ge.f32.partialorder %v159_v1, 0.5 }
  0x11   : > { %v252_v5 = vsel %vm160_vm0, 1.0, %v275_v4  ;;  %v162_v6 = vmax.f32 %v161_v2, 0.0  ;;  %v165_v7 = vmax.f32 %v164_v3, 0.0 }
  0x12   : > { %254 = vst [vmem:[%s157_s21 + $0x10] sm:$0xff] %v252_v5 }
  0x13   : > { %v163_v8 = vsel %vm160_vm0, %v162_v6, 0.0  ;;  %v166_v9 = vsel %vm160_vm0, 0.0, %v165_v7 }
  0x14   : > { %170 = vst [vmem:[%s157_s21] sm:$0xff] %v163_v8  ;;  %253 = vst [vmem:[%s157_s21 + $0x8] sm:$0xff] %v166_v9 }
  0x15 PF: > { %s12_s9 = sadd.s32 1, %s273_s9  }
  0x16   : > { %p9_p4 = scmp.ge.s32.totalorder %s12_s9, 4  }
  0x18   :  { %11 = sbr.rel (!%p9_p4) target bundleno = 1 (0x1), region = 63 }

</bundles_post_ra>
